<compile_context>
chip_gen: v6e
topology: v6e:2x2x1
jax: 0.10.0
libtpu: 0.0.40
codegen_flags: <defaults>
</compile_context>

<pallas_src>
import jax
import jax.numpy as jnp
from jax import lax
from jax.experimental import pallas as pl
from jax.experimental.pallas import tpu as pltpu


def _round_up(x, m):
    return ((x + m - 1) // m) * m


def _choose_batch_tile(b_pad, tb_max):
    """Largest multiple of 128 that divides b_pad, is <= tb_max, and leaves
    >= 2 grid steps whenever b_pad allows it (v7x megacore)."""
    units = b_pad // 128
    cap = max(1, min(tb_max // 128, -(-units // 2)))  # ceil(units / 2), >= 1
    while units % cap:
        cap -= 1
    return cap * 128


def gmf_kernel(uidx_ref, iidx_ref, ut_ref, it_ref, w_ref, b_ref, o_ref):
    # uidx_ref, iidx_ref : (1, TB) int32   user / item indices (lane-dense)
    # ut_ref             : (D, NU) bf16    user table, transposed, VMEM-resident
    # it_ref             : (D, NI) bf16    item table, transposed, VMEM-resident
    # w_ref              : (1, D)  f32     Linear(D, 1).weight
    # b_ref              : (1, 1)  f32     Linear bias (SMEM scalar)
    # o_ref              : (1, TB) f32     sigmoid(logits), lane-dense
    nu = ut_ref.shape[1]
    ni = it_ref.shape[1]
    tb = uidx_ref.shape[1]

    uidx = uidx_ref[...]                                   # (1, TB) int32
    iidx = iidx_ref[...]                                   # (1, TB) int32

    # One-hot gather on the MXU: one_hot[r, b] = (idx[b] == r).  Compare in
    # int32 (v5e-safe); cast the exact 0/1 values to bf16 only for the MXU.
    u_oh = (lax.broadcasted_iota(jnp.int32, (nu, tb), 0) == uidx)
    i_oh = (lax.broadcasted_iota(jnp.int32, (ni, tb), 0) == iidx)
    u_oh = u_oh.astype(jnp.float32).astype(jnp.bfloat16)   # (NU, TB)
    i_oh = i_oh.astype(jnp.float32).astype(jnp.bfloat16)   # (NI, TB)

    # bf16 x bf16 MXU gathers with f32 accumulation (exact: one-hot columns).
    ue_t = jnp.dot(ut_ref[...], u_oh, preferred_element_type=jnp.float32)  # (D, TB)
    ie_t = jnp.dot(it_ref[...], i_oh, preferred_element_type=jnp.float32)  # (D, TB)

    prod_t = ue_t * ie_t                                                   # (D, TB) f32, VPU

    # Latent-dim reduction as one f32 MXU dot -> lane-dense (1, TB) row.
    logits = jnp.dot(w_ref[...], prod_t, preferred_element_type=jnp.float32)  # (1, TB)
    logits = logits + b_ref[0, 0]                                              # SMEM scalar bias
    o_ref[...] = (1.0 / (1.0 + jnp.exp(-logits))).astype(o_ref.dtype)


def gmf_forward(user_idx, item_idx, user_table_t, item_table_t, w, b, *, tb_max=2048):
    """GMF forward: sigmoid(Linear(user_emb[u] * item_emb[i])).

    user_table_t / item_table_t are the (D, N) bf16 transposed embedding
    tables prepared once at model-init time (no per-call transpose/cast).
    Returns (B, 1) float32.
    """
    B = user_idx.shape[0]
    D = user_table_t.shape[0]

    b_pad = _round_up(B, 128)                 # pad waste bounded at < 128 rows
    tb = _choose_batch_tile(b_pad, tb_max)
    n_tiles = b_pad // tb

    pad = b_pad - B
    # Pad with index 0 (a valid row); padded outputs are sliced away below.
    uidx = jnp.pad(user_idx.astype(jnp.int32), (0, pad))[None, :]   # (1, b_pad)
    iidx = jnp.pad(item_idx.astype(jnp.int32), (0, pad))[None, :]   # (1, b_pad)

    out = pl.pallas_call(
        gmf_kernel,
        out_shape=jax.ShapeDtypeStruct((1, b_pad), jnp.float32),
        grid_spec=pltpu.PrefetchScalarGridSpec(
            num_scalar_prefetch=0,
            grid=(n_tiles,),
            in_specs=[
                pl.BlockSpec((1, tb), lambda i: (0, i)),              # user idx tile
                pl.BlockSpec((1, tb), lambda i: (0, i)),              # item idx tile
                pl.BlockSpec(user_table_t.shape, lambda i: (0, 0)),   # resident user table
                pl.BlockSpec(item_table_t.shape, lambda i: (0, 0)),   # resident item table
                pl.BlockSpec((1, D), lambda i: (0, 0)),               # affine weight
                pl.BlockSpec(memory_space=pltpu.MemorySpace.SMEM),    # bias scalar
            ],
            out_specs=pl.BlockSpec((1, tb), lambda i: (0, i)),        # lane-dense output
        ),
        compiler_params=pltpu.CompilerParams(
            dimension_semantics=("parallel",)),
    )(uidx, iidx, user_table_t, item_table_t, w, b)

    return out[0, :B][:, None]   # (B, 1)


if __name__ == "__main__":
    # Small config consistent with the module.
    num_users = 64
    num_items = 48
    latent_dim = 32
    batch = 16

    key = jax.random.PRNGKey(0)
    k_user, k_item, k_w, k_uid, k_iid = jax.random.split(key, 5)

    # weight_init_gaussian: N(0, 0.01) for embeddings and the linear weight.
    user_table = 0.01 * jax.random.normal(k_user, (num_users, latent_dim), jnp.float32)
    item_table = 0.01 * jax.random.normal(k_item, (num_items, latent_dim), jnp.float32)
    affine_w = 0.01 * jax.random.normal(k_w, (1, latent_dim), jnp.float32)   # Linear(D,1).weight
    affine_b = jnp.zeros((1, 1), jnp.float32)                                # Linear(D,1).bias

    user_idx = jax.random.randint(k_uid, (batch,), 0, num_users, jnp.int32)
    item_idx = jax.random.randint(k_iid, (batch,), 0, num_items, jnp.int32)

    # Model-init-time parameter prep (done ONCE, not per forward call):
    # transposed (D, N) bf16 copies of the embedding tables for the kernel.
    user_table_t = user_table.T.astype(jnp.bfloat16)
    item_table_t = item_table.T.astype(jnp.bfloat16)

    rating = gmf_forward(user_idx, item_idx, user_table_t, item_table_t,
                         affine_w, affine_b)
    rating = jax.block_until_ready(rating)

    # Pure-JAX f32 reference check.
    ue = user_table[user_idx]
    ie = item_table[item_idx]
    ref = jax.nn.sigmoid((ue * ie) @ affine_w.T + affine_b[0])
    assert rating.shape == (batch, 1)
    assert jnp.allclose(rating, ref, atol=2e-5), "mismatch vs reference"

    print("KERNEL_OK")
</pallas_src>

<mosaic_0001>
module attributes {stable_mosaic.version = 11 : i64} {
  func.func @gmf_kernel(%arg0: i32, %arg1: memref<1x128xi32, #tpu.memory_space<vmem>>, %arg2: memref<1x128xi32, #tpu.memory_space<vmem>>, %arg3: memref<32x64xbf16, #tpu.memory_space<vmem>>, %arg4: memref<32x48xbf16, #tpu.memory_space<vmem>>, %arg5: memref<1x32xf32, #tpu.memory_space<vmem>>, %arg6: memref<1x1xf32, #tpu.memory_space<smem>>, %arg7: memref<1x128xf32, #tpu.memory_space<vmem>>) attributes {dimension_semantics = [#tpu.dimension_semantics<parallel>], iteration_bounds = array<i64: 1>, scalar_prefetch = 0 : i64, scratch_operands = 0 : i64, tpu.core_type = #tpu.core_type<tc>, window_params = [{transform_indices = @transform_0, window_bounds = array<i64: 1, 128>}, {transform_indices = @transform_1, window_bounds = array<i64: 1, 128>}, {pipeline_mode = #tpu.pipeline_mode<synchronous>, transform_indices = @transform_2, window_bounds = array<i64: 32, 64>}, {pipeline_mode = #tpu.pipeline_mode<synchronous>, transform_indices = @transform_3, window_bounds = array<i64: 32, 48>}, {pipeline_mode = #tpu.pipeline_mode<synchronous>, transform_indices = @transform_4, window_bounds = array<i64: 1, 32>}, {transform_indices = @transform_5, window_bounds = array<i64: 1, 1>}, {transform_indices = @transform_6, window_bounds = array<i64: 1, 128>}]} {
    %c0 = arith.constant 0 : index
    %c0_0 = arith.constant 0 : index
    %0 = vector.load %arg1[%c0, %c0_0] : memref<1x128xi32, #tpu.memory_space<vmem>>, vector<1x128xi32>
    %c0_1 = arith.constant 0 : index
    %c0_2 = arith.constant 0 : index
    %1 = vector.load %arg2[%c0_1, %c0_2] : memref<1x128xi32, #tpu.memory_space<vmem>>, vector<1x128xi32>
    %2 = tpu.iota {dimensions = array<i32: 0>} : vector<64x128xi32>
    %3 = vector.broadcast %0 : vector<1x128xi32> to vector<64x128xi32>
    %4 = arith.cmpi eq, %2, %3 : vector<64x128xi32>
    %5 = tpu.iota {dimensions = array<i32: 0>} : vector<48x128xi32>
    %6 = vector.broadcast %1 : vector<1x128xi32> to vector<48x128xi32>
    %7 = arith.cmpi eq, %5, %6 : vector<48x128xi32>
    %8 = arith.extui %4 : vector<64x128xi1> to vector<64x128xi32>
    %9 = arith.sitofp %8 : vector<64x128xi32> to vector<64x128xf32>
    %10 = arith.truncf %9 : vector<64x128xf32> to vector<64x128xbf16>
    %11 = arith.extui %7 : vector<48x128xi1> to vector<48x128xi32>
    %12 = arith.sitofp %11 : vector<48x128xi32> to vector<48x128xf32>
    %13 = arith.truncf %12 : vector<48x128xf32> to vector<48x128xbf16>
    %c0_3 = arith.constant 0 : index
    %c0_4 = arith.constant 0 : index
    %14 = vector.load %arg3[%c0_3, %c0_4] : memref<32x64xbf16, #tpu.memory_space<vmem>>, vector<32x64xbf16>
    %cst = arith.constant dense<0.000000e+00> : vector<32x128xf32>
    %15 = tpu.matmul %14, %10, %cst {dimension_numbers = #tpu.dot_dimension_numbers<[1], [0], [0], [1], [0, 0, 1, 1], [], []>} : vector<32x64xbf16>, vector<64x128xbf16>, vector<32x128xf32> -> vector<32x128xf32>
    %c0_5 = arith.constant 0 : index
    %c0_6 = arith.constant 0 : index
    %16 = vector.load %arg4[%c0_5, %c0_6] : memref<32x48xbf16, #tpu.memory_space<vmem>>, vector<32x48xbf16>
    %cst_7 = arith.constant dense<0.000000e+00> : vector<32x128xf32>
    %17 = tpu.matmul %16, %13, %cst_7 {dimension_numbers = #tpu.dot_dimension_numbers<[1], [0], [0], [1], [0, 0, 1, 1], [], []>} : vector<32x48xbf16>, vector<48x128xbf16>, vector<32x128xf32> -> vector<32x128xf32>
    %18 = arith.mulf %15, %17 : vector<32x128xf32>
    %c0_8 = arith.constant 0 : index
    %c0_9 = arith.constant 0 : index
    %19 = vector.load %arg5[%c0_8, %c0_9] : memref<1x32xf32, #tpu.memory_space<vmem>>, vector<1x32xf32>
    %cst_10 = arith.constant dense<0.000000e+00> : vector<1x128xf32>
    %20 = tpu.matmul %19, %18, %cst_10 {dimension_numbers = #tpu.dot_dimension_numbers<[1], [0], [0], [1], [0, 0, 1, 1], [], []>} : vector<1x32xf32>, vector<32x128xf32>, vector<1x128xf32> -> vector<1x128xf32>
    %c0_11 = arith.constant 0 : index
    %c0_12 = arith.constant 0 : index
    %21 = memref.load %arg6[%c0_11, %c0_12] : memref<1x1xf32, #tpu.memory_space<smem>>
    %22 = vector.broadcast %21 : f32 to vector<1x128xf32>
    %23 = arith.addf %20, %22 : vector<1x128xf32>
    %cst_13 = arith.constant 0.000000e+00 : f32
    %24 = vector.broadcast %cst_13 : f32 to vector<1x128xf32>
    %25 = arith.subf %24, %23 : vector<1x128xf32>
    %26 = math.exp %25 : vector<1x128xf32>
    %cst_14 = arith.constant 1.000000e+00 : f32
    %27 = vector.broadcast %cst_14 : f32 to vector<1x128xf32>
    %28 = arith.addf %27, %26 : vector<1x128xf32>
    %cst_15 = arith.constant 1.000000e+00 : f32
    %29 = vector.broadcast %cst_15 : f32 to vector<1x128xf32>
    %30 = arith.divf %29, %28 : vector<1x128xf32>
    %c0_16 = arith.constant 0 : index
    %c0_17 = arith.constant 0 : index
    %31 = vector.load %arg7[%c0_16, %c0_17] : memref<1x128xf32, #tpu.memory_space<vmem>>, vector<1x128xf32>
    tpu.vector_store %arg7[%c0_16, %c0_17], %30 {strides = array<i32>} : memref<1x128xf32, #tpu.memory_space<vmem>>, vector<1x128xf32>,
    return
  }
  func.func @transform_0(%arg0: i32) -> (i32, i32) {
    %c0_i32 = arith.constant 0 : i32
    %c0_i32_0 = arith.constant 0 : i32
    return %c0_i32, %arg0 : i32, i32
  }
  func.func @transform_1(%arg0: i32) -> (i32, i32) {
    %c0_i32 = arith.constant 0 : i32
    %c0_i32_0 = arith.constant 0 : i32
    return %c0_i32, %arg0 : i32, i32
  }
  func.func @transform_2(%arg0: i32) -> (i32, i32) {
    %c0_i32 = arith.constant 0 : i32
    %c0_i32_0 = arith.constant 0 : i32
    %c0_i32_1 = arith.constant 0 : i32
    return %c0_i32, %c0_i32_0 : i32, i32
  }
  func.func @transform_3(%arg0: i32) -> (i32, i32) {
    %c0_i32 = arith.constant 0 : i32
    %c0_i32_0 = arith.constant 0 : i32
    %c0_i32_1 = arith.constant 0 : i32
    return %c0_i32, %c0_i32_0 : i32, i32
  }
  func.func @transform_4(%arg0: i32) -> (i32, i32) {
    %c0_i32 = arith.constant 0 : i32
    %c0_i32_0 = arith.constant 0 : i32
    %c0_i32_1 = arith.constant 0 : i32
    return %c0_i32, %c0_i32_0 : i32, i32
  }
  func.func @transform_5(%arg0: i32) -> (i32, i32) {
    %c0_i32 = arith.constant 0 : i32
    %c0_i32_0 = arith.constant 0 : i32
    %c0_i32_1 = arith.constant 0 : i32
    return %c0_i32, %c0_i32_0 : i32, i32
  }
  func.func @transform_6(%arg0: i32) -> (i32, i32) {
    %c0_i32 = arith.constant 0 : i32
    %c0_i32_0 = arith.constant 0 : i32
    return %c0_i32, %arg0 : i32, i32
  }
}

</mosaic_0001>

<bundles_post_ra>
// kernel: tpu_custom_call.1
= control target key start
LH: loop header
LB: loop body
LE: loop exit
PB: predicated region body
PF: predicated region fallthrough
CT: control target
= control target key end

     0   :  { %12 = vsyncpa [#allocation4], 0  ;;  %s606_s0 = inlined_call_operand.vmem [shape: s32[1,128], index: 0, kind: input, shape index: {}]   ;;  %s607_s1 = inlined_call_operand.vmem [shape: s32[1,128], index: 1, kind: input, shape index: {}]   ;;  %s608_s2 = inlined_call_operand.hbm [shape: bf16[32,64], index: 2, kind: input, shape index: {}]   ;;  %s609_s3 = inlined_call_operand.hbm [shape: bf16[32,48], index: 3, kind: input, shape index: {}]   ;;  %s610_s4 = inlined_call_operand.vmem [shape: f32[1,32], index: 4, kind: input, shape index: {}]   ;;  %s611_s5 = inlined_call_operand.<no memory space> [shape: f32[1,1], index: 5, kind: input, shape index: {}]   ;;  %s612_s6 = inlined_call_operand.hbm [shape: f32[1,128], index: 6, kind: output, shape index: {}]  }
   0x1   :  { %13 = vsyncpa [#allocation7], 0 }
   0x2   :  { %14 = vsyncpa [#allocation5], 0  ;;  %s536_s21 = smov [#allocation3]  }
   0x3   :  { %s24_s22 = sshll.u32 %s536_s21, 4  ;;  %s25_s22 = int_to_ptr.vmem [resolvable:$true] %s24_s22 }
   0x4   :  { %s478_s23 = scalar_lea.vmem %s25_s22, 256  ;;  %p483_p1 = scmp.lt.s32.totalorder %s25_s22, %s25_s22 }
   0x5   :  { %p479_p0 = scmp.ne.s32.totalorder %s25_s22, %s478_s23  ;;  %p484_p2 = scmp.lt.s32.totalorder %s478_s23, %s478_s23 }
   0x7   :  { %p485_p3 = por %p484_p2, %p483_p1 }
   0x9   :  { %p486_p4 = pnand %p485_p3, %p479_p0 }
   0xb   :  { %489 = shalt.err (!%p486_p4)
}
   0xc   :  { %s537_s24 = smov 64   ;;  %s538_s25 = smov 4  }
   0xd   :  { %30 = dma.hbm_to_vmem [thread:$0]  %s608_s2, 256, %s25_s22, [#allocation4], %s537_s24, %s537_s24, %s538_s25  }
   0xe   :  { %s539_s28 = smov [#allocation6]  }
   0xf   :  { %s36_s29 = sshll.u32 %s539_s28, 4  ;;  %s37_s29 = int_to_ptr.vmem [resolvable:$true] %s36_s29 }
  0x10   :  { %s498_s30 = scalar_lea.vmem %s37_s29, 256  ;;  %p503_p6 = scmp.lt.s32.totalorder %s37_s29, %s37_s29 }
  0x11   :  { %p499_p5 = scmp.ne.s32.totalorder %s37_s29, %s498_s30  ;;  %p504_p7 = scmp.lt.s32.totalorder %s498_s30, %s498_s30 }
  0x13   :  { %p505_p8 = por %p504_p7, %p503_p6 }
  0x15   :  { %p506_p9 = pnand %p505_p8, %p499_p5 }
  0x17   :  { %509 = shalt.err (!%p506_p9)
}
  0x18   :  { %42 = dma.hbm_to_vmem [thread:$0]  %s609_s3, 256, %s37_s29, [#allocation7], %s537_s24, %s537_s24, %s538_s25  }
  0x19   :  { %530 = dma.done.wait [#allocation4], 256  }
  0x1a   :  { %531 = vsyncadd [#allocation4], 4294967040 }
  0x1b   :  { %532 = dma.done.wait [#allocation7], 256  }
  0x1c   :  { %533 = vsyncadd [#allocation7], 4294967040  ;;  %v56_v0 = vlaneseq  ;;  %v366_v9 = vld [vmem:[%s606_s0] ss:$0 sm:$0xff]  ;;  %v462_v11 = vld [vmem:[#allocation6] sm:$0xff]   ;;  %vm206_vm12 = vcmask 392192   ;;  %v268_v30 = vstv %s611_s5 }
  0x1d   :  { %v367_v10 = vld [vmem:[%s607_s1] ss:$0 sm:$0xff]  ;;  %v540_v12 = vmov 1.0|1.0   ;;  %439 = vmatprep.mubr.msk.bf16.mxu1 %vm206_vm12, %v462_v11  ;;  %v463_v14 = vld [vmem:[#allocation6 + $0x8] sm:$0xff]   ;;  %v465_v15 = vld [vmem:[#allocation3 + $0x8] sm:$0xff]  }
  0x1e   :  { %v57_v1 = vshrl.u32 %v56_v0, 7  ;;  %v464_v13 = vld [vmem:[#allocation3] sm:$0xff]   ;;  %v541_v16 = vmov 0.0   ;;  %s543_s13 = smov [#allocation8]  }
  0x1f   :  { %v266_v29 = vld [vmem:[%s610_s4] sm:$0x1]  ;;  %s356_s14 = sshll.u32 %s543_s13, 4  ;;  %s357_s14 = int_to_ptr.vmem [resolvable:$true] %s356_s14 }
  0x20   :  { %v63_v2 = vadd.s32 48, %v57_v1  ;;  %v64_v3 = vadd.s32 56, %v57_v1  ;;  %v61_v4 = vadd.s32 32, %v57_v1  ;;  %v62_v5 = vadd.s32 40, %v57_v1  ;;  %s510_s4 = scalar_lea.vmem %s357_s14, 16  ;;  %s514_s15 = scalar_lea.vmem %s357_s14, 32 }
  0x21   :  { %v59_v6 = vadd.s32 16, %v57_v1  ;;  %v60_v7 = vadd.s32 24, %v57_v1  ;;  %v58_v8 = vadd.s32 8, %v57_v1  ;;  %vm81_vm14 = vcmp.eq.s32.totalorder %v57_v1, %v367_v10  ;;  %p511_p10 = scmp.ne.s32.totalorder %s357_s14, %s510_s4  ;;  %p515_p11 = scmp.lt.s32.totalorder %s357_s14, %s357_s14 }
  0x22   :  { %vm75_vm0 = vcmp.eq.s32.totalorder %v63_v2, %v366_v9  ;;  %vm76_vm1 = vcmp.eq.s32.totalorder %v64_v3, %v366_v9  ;;  %vm85_vm2 = vcmp.eq.s32.totalorder %v61_v4, %v367_v10  ;;  %vm86_vm3 = vcmp.eq.s32.totalorder %v62_v5, %v367_v10  ;;  %p516_p12 = scmp.lt.s32.totalorder %s514_s15, %s510_s4 }
  0x23   :  { %vm384_vm4 = vmpackc.low %vm76_vm1, %vm75_vm0  ;;  %vm73_vm5 = vcmp.eq.s32.totalorder %v61_v4, %v366_v9  ;;  %vm74_vm6 = vcmp.eq.s32.totalorder %v62_v5, %v366_v9  ;;  %vm83_vm7 = vcmp.eq.s32.totalorder %v59_v6, %v367_v10  ;;  %vm84_vm8 = vcmp.eq.s32.totalorder %v60_v7, %v367_v10 }
  0x24   :  { %421 = vmatprep.subr.msk.bf16.mxu0 %vm384_vm4, %v540_v12  ;;  %vm396_vm9 = vmpackc.low %vm86_vm3, %vm85_vm2  ;;  %vm71_vm10 = vcmp.eq.s32.totalorder %v59_v6, %v366_v9  ;;  %vm72_vm11 = vcmp.eq.s32.totalorder %v60_v7, %v366_v9  ;;  %vm82_vm15 = vcmp.eq.s32.totalorder %v58_v8, %v367_v10  ;;  %vm136_vm0 = vcmask 523264   ;;  %p517_p13 = por %p516_p12, %p515_p11 }
  0x25   :  { %433 = vmatprep.subr.msk.bf16.mxu1 %vm396_vm9, %v540_v12  ;;  %422 = vmatpush3.bf16.msk.msra.mxu0 %vm384_vm4, %v540_v12  ;;  %vm386_vm13 = vmpackc.low %vm74_vm6, %vm73_vm5  ;;  %vm69_vm4 = vcmp.eq.s32.totalorder %v57_v1, %v366_v9  ;;  %vm70_vm5 = vcmp.eq.s32.totalorder %v58_v8, %v366_v9 }
  0x26   :  { %434 = vmatpush3.bf16.msk.msra.mxu1 %vm396_vm9, %v540_v12  ;;  %423 = vmatprep.subr.msk.bf16.mxu0 %vm386_vm13, %v540_v12  ;;  %vm398_vm1 = vmpackc.low %vm84_vm8, %vm83_vm7  ;;  %vm542_vm7 = vmmov 0   ;;  %vm269_vm8 = vcmask 261120   ;;  %p518_p0 = pnand %p517_p13, %p511_p10 }
  0x27   :  { %435 = vmatprep.subr.msk.bf16.mxu1 %vm398_vm1, %v540_v12  ;;  %vm388_vm2 = vmpackc.low %vm72_vm11, %vm71_vm10  ;;  %429 = vmatprep.mubr.msk.bf16.mxu0 %vm136_vm0, %v464_v13 }
  0x28   :  { %vm400_vm3 = vmpackc.low %vm82_vm15, %vm81_vm14 }
  0x29   :  { %424 = vmatpush3.bf16.msk.msra.mxu0 %vm386_vm13, %v540_v12  ;;  %vm390_vm6 = vmpackc.low %vm70_vm5, %vm69_vm4 }
  0x2a   :  { %436 = vmatpush3.bf16.msk.msra.mxu1 %vm398_vm1, %v540_v12  ;;  %425 = vmatprep.subr.msk.bf16.mxu0 %vm388_vm2, %v540_v12 }
  0x2b   :  { %437 = vmatprep.subr.msk.bf16.mxu1 %vm400_vm3, %v540_v12 }
  0x2d   :  { %426 = vmatpush3.bf16.msk.msra.mxu0 %vm388_vm2, %v540_v12 }
  0x2e   :  { %438 = vmatpush3.bf16.msk.msra.mxu1 %vm400_vm3, %v540_v12  ;;  %427 = vmatprep.subr.msk.bf16.mxu0 %vm390_vm6, %v540_v12 }
  0x2f   :  { %443 = vmatprep.subr.mxu1 %v541_v16 }
  0x31   :  { %440 = vmatmul.mubr.msk.bf16.vlgmr.msra.gmra.mxu1 %vm206_vm12, %v463_v14  ;;  %428 = vmatpush3.bf16.msk.msra.mxu0 %vm390_vm6, %v540_v12 }
  0x32   :  { %451 = vmatprep.mubr.msk.f32.mxu1 %vm542_vm7, %v541_v16 }
  0x34   :  { %430 = vmatmul.mubr.msk.bf16.vlgmr.msra.gmra.mxu0 %vm136_vm0, %v465_v15 }
  0xf1   :  { %v441_v17 = vpop.f32.mrf.mxu1 }
  0xf3   :  { %v247_v18 = vpop.f32.mrf.mxu1 }
  0xf4   :  { %v431_v19 = vpop.f32.mrf.mxu0 }
  0xf5   :  { %v442_v21 = vpop.f32.mrf.mxu1  ;;  %v264_v25 = vmul.f32 %v441_v17, %v431_v19 }
  0xf6   :  { %v177_v20 = vpop.f32.mrf.mxu0 }
  0xf7   :  { %v250_v26 = vpop.f32.mrf.mxu1  ;;  %v262_v28 = vmul.f32 %v247_v18, %v177_v20 }
  0xf8   :  { %v432_v22 = vpop.f32.mrf.mxu0 }
  0xf9   :  { %v265_v23 = vmul.f32 %v442_v21, %v432_v22 }
  0xfa   :  { %v180_v24 = vpop.f32.mrf.mxu0 }
  0xfb   :  { %444 = vmatpush3.msra.mxu1 %v265_v23  ;;  %v263_v27 = vmul.f32 %v250_v26, %v180_v24 }
  0xfc   :  { %445 = vmatprep.subr.mxu1 %v541_v16 }
  0xfd   :  { %446 = vmatpush3.msra.mxu1 %v264_v25 }
  0xfe   :  { %447 = vmatprep.subr.mxu1 %v541_v16 }
  0xff   :  { %448 = vmatpush3.msra.mxu1 %v263_v27 }
 0x100   :  { %449 = vmatprep.subr.mxu1 %v541_v16 }
 0x101   :  { %450 = vmatpush3.msra.mxu1 %v262_v28 }
 0x102   :  { %452 = vmatmul.mubr.msk.f32.vlgmr.msra.gmra.mxu1 %vm269_vm8, %v266_v29 }
 0x1c2   :  { %v339_v31 = vpop.f32.mrf.mxu1 }
 0x1c3   :  { %v340_v32 = vadd.f32 %v339_v31, %v268_v30 }
 0x1c4   :  { %v453_v33 = vpop.f32.mrf.mxu1 }
 0x1c5   :  { %v343_v34 = vsub.f32 0.0, %v340_v32 }
 0x1c7   :  { %v344_v35 = vmul.f32 1.442695, %v343_v34 }
 0x1c9   :  { %466 = vpow2.f32 %v344_v35 }
 0x1d6   :  { %v467_v36 = vpop.eup %466 }
 0x1d7   :  { %v346_v37 = vadd.f32 1.0, %v467_v36 }
 0x1d9   :  { %468 = vrcp.f32 %v346_v37 }
 0x1e6   :  { %v469_v38 = vpop.eup %468 }
 0x1e7   :  { %349 = vst [vmem:[#allocation8] sm:$0x1] %v469_v38 }
 0x1e8   :  { %521 = shalt.err (!%p518_p0)
}
 0x1e9   :  { %359 = dma.vmem_to_hbm [thread:$0]  %s357_s14, 16, %s612_s6, [#allocation5]  }
 0x1ea   :  { %534 = dma.done.wait [#allocation5], 16  }
 0x1eb   :  { %535 = vsyncadd [#allocation5], 4294967280 }
 0x1ec   :  { %363 = vsyncpa [#allocation4], 1 }
 0x1ed   :  { %364 = vsyncpa [#allocation7], 1 }
 0x1ee   :  { %365 = vsyncpa [#allocation5], 1 }

</bundles_post_ra>
